<compile_context>
chip_gen: v7x
topology: tpu7x:2x2x1
jax: 0.10.0
libtpu: 0.0.40
codegen_flags: <defaults>
</compile_context>

<pallas_src>
import functools

import jax
import jax.numpy as jnp
from jax import lax
from jax.experimental import pallas as pl
from jax.experimental.pallas import tpu as pltpu


def _round_up(x, m):
    return (x + m - 1) // m * m


def _mobileconv_flat_kernel(x_ref, wdw_ref, mask_ref, b1_ref, wpw_ref, b2_ref,
                            out_ref, *, K, pad, W, Cin, Cout, L, Lpad,
                            compute_dtype, use_mxu, tap_needs_mask):
    """Fast path: stride == 1 and 'same' geometry (2*pad == K-1).

    x_ref   : (1, Cin, L)      raw (unpadded) image, spatial dims flattened
    wdw_ref : (Cin, K*K)       depthwise taps, BN1 scale folded (compute dtype)
    mask_ref: (K*K, L)         per-tap border-validity masks (compute dtype)
    b1_ref  : (Cin, 1)         folded BN1 bias (f32)
    wpw_ref : (Cout, Cin)      1x1 weights, BN2 scale folded (f32)
    b2_ref  : (Cout, 1)        folded BN2 bias (f32)
    out_ref : (1, Cout, Lpad)  lane-dense flattened output, Lpad = ceil128(L)
    """
    # Hoisted loads + a single cast (kept out of the unrolled K*K tap loop).
    xw = x_ref[0].astype(compute_dtype)      # (Cin, L)
    w_all = wdw_ref[...]                      # (Cin, K*K)
    m_all = mask_ref[...]                     # (K*K, L)
    wpw = wpw_ref[...]                        # (Cout, Cin)

    # ---- depthwise conv: roll-based taps on the lane-flat image ------------
    # Output flat index f = r*W + c needs x[r+kh-pad, c+kw-pad], i.e. the flat
    # input shifted by d = (kh-pad)*W + (kw-pad).  pltpu.roll runs on the XLU
    # slot (overlaps the VALU multiply/adds); taps whose shift wrapped across
    # an image border are zeroed by the precomputed masks (this is also how
    # the zero padding is realized -- no jnp.pad of the input anywhere).
    acc = jnp.zeros((Cin, L), compute_dtype)
    for kh in range(K):
        for kw in range(K):
            t = kh * K + kw
            d = (kh - pad) * W + (kw - pad)
            shifted = xw if d == 0 else pltpu.roll(xw, (-d) % L, 1)
            contrib = shifted * w_all[:, t:t + 1]        # per-channel tap
            if tap_needs_mask[t]:                        # static per-tap check
                contrib = contrib * m_all[t:t + 1, :]
            acc = acc + contrib

    # ---- folded BN1 bias + ReLU (layout is already lane-dense) -------------
    h = jnp.maximum(acc.astype(jnp.float32) + b1_ref[...], 0.0)   # (Cin, L)

    # ---- pointwise 1x1 conv -------------------------------------------------
    if use_mxu:
        # (Cout, Cin) x (Cin, L): MXU matmul (vector-extended slot, overlaps
        # the depthwise VPU work); bf16 operands on v6e/v7x when requested.
        y = jnp.dot(wpw.astype(compute_dtype), h.astype(compute_dtype),
                    preferred_element_type=jnp.float32)            # (Cout, L)
    else:
        # Tiny Cin (<= 8): unrolled VPU outer-product accumulation.
        y = jnp.zeros((Cout, L), jnp.float32)
        for c in range(Cin):
            y = y + wpw[:, c:c + 1] * h[c:c + 1, :]

    # ---- folded BN2 bias + ReLU, lane-dense (unmasked) store ----------------
    y = jnp.maximum(y + b2_ref[...], 0.0)
    if Lpad != L:  # pad lanes so the store never uses masked vst
        y = jnp.concatenate(
            [y, jnp.zeros((Cout, Lpad - L), jnp.float32)], axis=1)
    out_ref[0] = y.astype(out_ref.dtype)


def _mobileconv_generic_kernel(x_ref, wdw_ref, b1_ref, wpw_ref, b2_ref,
                               out_ref, *, K, stride, Hout, Wout, Cin, Cout,
                               Lpad, use_mxu):
    """Generic fallback (stride > 1 or non-'same' geometry).

    TODO(synk): unoptimized: low lane occupancy and lane-strided per-tap
    slices; pre-splitting W by stride in the wrapper would make the kw reads
    contiguous lanes.
    """
    xw = x_ref[0].astype(jnp.float32)                    # (Cin, Hp, Wp)
    w_all = wdw_ref[...]                                 # (Cin, K*K)
    wpw = wpw_ref[...]                                   # (Cout, Cin)

    acc = jnp.zeros((Cin, Hout, Wout), jnp.float32)
    for kh in range(K):
        for kw in range(K):
            patch = xw[:, kh:kh + (Hout - 1) * stride + 1:stride,
                          kw:kw + (Wout - 1) * stride + 1:stride]
            acc = acc + patch * w_all[:, kh * K + kw:kh * K + kw + 1].reshape(
                Cin, 1, 1)

    h = jnp.maximum(acc + b1_ref[...].reshape(Cin, 1, 1), 0.0)
    # NOTE: this reshape is a relayout (not a view) when Wout % 128 != 0.
    L = Hout * Wout
    h = h.reshape(Cin, L)

    if use_mxu:
        y = jnp.dot(wpw, h, preferred_element_type=jnp.float32)
    else:
        y = jnp.zeros((Cout, L), jnp.float32)
        for c in range(Cin):
            y = y + wpw[:, c:c + 1] * h[c:c + 1, :]

    y = jnp.maximum(y + b2_ref[...], 0.0)
    if Lpad != L:
        y = jnp.concatenate(
            [y, jnp.zeros((Cout, Lpad - L), jnp.float32)], axis=1)
    out_ref[0] = y.astype(out_ref.dtype)


def mobile_conv(x_nchw, w_dw, w_pw, bn1, bn2, *, stride, padding,
                compute_dtype=jnp.float32):
    """Fused mobileConv forward (inference-mode BatchNorm).

    x_nchw: (N, Cin, H, W); w_dw: (Cin, 1, K, K); w_pw: (Cout, Cin, 1, 1).
    bn1 / bn2: (gamma, beta, running_mean, running_var) of shape (Cin,)/(Cout,).
    compute_dtype: dtype of the depthwise tap math.  Use jnp.bfloat16 on
      v6e/v7x (packed bf16 VALU, ~2x tap throughput); keep jnp.float32 on v5e
      (no bf16 VPU) or when full f32 accuracy is required.
    Returns NCHW output, matching the PyTorch module.
    """
    N, Cin, H, W = x_nchw.shape
    K = w_dw.shape[-1]
    Cout = w_pw.shape[0]
    Hout = (H + 2 * padding - K) // stride + 1
    Wout = (W + 2 * padding - K) // stride + 1
    eps = 1e-5

    # ---- fold BN (inference mode) into the conv weights ---------------------
    g1, be1, m1, v1 = bn1
    g2, be2, m2, v2 = bn2
    s1 = g1 / jnp.sqrt(v1 + eps)
    b1 = be1 - m1 * s1
    s2 = g2 / jnp.sqrt(v2 + eps)
    b2 = be2 - m2 * s2

    wdw2d = (w_dw[:, 0].astype(jnp.float32)
             * s1[:, None, None]).reshape(Cin, K * K)         # (Cin, K*K)
    wpw = w_pw[:, :, 0, 0].astype(jnp.float32) * s2[:, None]  # (Cout, Cin)
    b1v = b1.reshape(Cin, 1).astype(jnp.float32)
    b2v = b2.reshape(Cout, 1).astype(jnp.float32)

    use_mxu = (Cin > 8) or (Cin * Cout >= 2048)
    HWf = Hout * Wout
    Lpad = _round_up(HWf, 128)                # lane-dense (unmasked) stores
    c_it = jnp.dtype(compute_dtype).itemsize
    itm = x_nchw.dtype.itemsize
    fast = (stride == 1) and (2 * padding == K - 1)

    if fast:
        L = H * W
        xin = x_nchw.reshape(N, Cin, L)       # free metadata reshape, NO pad

        # Per-tap border-validity masks (this is the folded zero padding).
        rr = jnp.arange(H)[:, None]
        cc = jnp.arange(W)[None, :]
        masks, needs = [], []
        for kh in range(K):
            for kw in range(K):
                lo_r, hi_r = padding - kh, H + padding - kh
                lo_c, hi_c = padding - kw, W + padding - kw
                m = (rr >= lo_r) & (rr < hi_r) & (cc >= lo_c) & (cc < hi_c)
                masks.append(m.reshape(1, L))
                needs.append(lo_r > 0 or hi_r < H or lo_c > 0 or hi_c < W)
        mask_arr = jnp.concatenate(masks, axis=0).astype(compute_dtype)

        kernel = functools.partial(
            _mobileconv_flat_kernel, K=K, pad=padding, W=W, Cin=Cin, Cout=Cout,
            L=L, Lpad=Lpad, compute_dtype=compute_dtype, use_mxu=use_mxu,
            tap_needs_mask=tuple(needs))
        in_specs = [
            pl.BlockSpec((1, Cin, L), lambda n: (n, 0, 0)),
            pl.BlockSpec((Cin, K * K), lambda n: (0, 0)),
            pl.BlockSpec((K * K, L), lambda n: (0, 0)),
            pl.BlockSpec((Cin, 1), lambda n: (0, 0)),
            pl.BlockSpec((Cout, Cin), lambda n: (0, 0)),
            pl.BlockSpec((Cout, 1), lambda n: (0, 0)),
        ]
        args = (xin, wdw2d.astype(compute_dtype), mask_arr, b1v, wpw, b2v)
        in_blk = Cin * L * itm
        fixed = (Cin * K * K + Cin) * c_it + K * K * L * c_it + \
                (Cout * Cin + Cout) * 4
        work = Cin * L * (2 * c_it + 4) + Cout * Lpad * 4
        bytes_accessed = N * (Cin * L + Cout * Lpad) * itm + fixed
    else:
        xp = jnp.pad(x_nchw, ((0, 0), (0, 0),
                              (padding, padding), (padding, padding)))
        Hp, Wp = xp.shape[2], xp.shape[3]
        kernel = functools.partial(
            _mobileconv_generic_kernel, K=K, stride=stride, Hout=Hout,
            Wout=Wout, Cin=Cin, Cout=Cout, Lpad=Lpad, use_mxu=use_mxu)
        in_specs = [
            pl.BlockSpec((1, Cin, Hp, Wp), lambda n: (n, 0, 0, 0)),
            pl.BlockSpec((Cin, K * K), lambda n: (0, 0)),
            pl.BlockSpec((Cin, 1), lambda n: (0, 0)),
            pl.BlockSpec((Cout, Cin), lambda n: (0, 0)),
            pl.BlockSpec((Cout, 1), lambda n: (0, 0)),
        ]
        args = (xp, wdw2d, b1v, wpw, b2v)
        in_blk = Cin * Hp * Wp * itm
        fixed = (Cin * K * K + Cin + Cout * Cin + Cout) * 4
        work = Cin * (Hp * Wp + 3 * HWf) * 4 + Cout * Lpad * 4
        bytes_accessed = N * (Cin * Hp * Wp + Cout * Lpad) * itm + fixed

    out_blk = Cout * Lpad * itm
    # Double-buffered blocks + working values, ~2x headroom, capped at 48 MiB
    # so the request stays v7x-safe (64 MiB physical VMEM per TensorCore).
    vmem_need = 2 * (in_blk + out_blk + fixed) + work
    vmem_limit = int(min(48 * 2**20, max(16 * 2**20, 2 * vmem_need)))
    flops = 2 * N * HWf * (K * K * Cin + Cin * Cout)

    out_flat = pl.pallas_call(
        kernel,
        out_shape=jax.ShapeDtypeStruct((N, Cout, Lpad), x_nchw.dtype),
        grid_spec=pltpu.PrefetchScalarGridSpec(
            num_scalar_prefetch=0,
            grid=(N,),
            in_specs=in_specs,
            out_specs=pl.BlockSpec((1, Cout, Lpad), lambda n: (n, 0, 0)),
        ),
        compiler_params=pltpu.CompilerParams(
            dimension_semantics=("parallel",),
            vmem_limit_bytes=vmem_limit),
        cost_estimate=pl.CostEstimate(flops=flops, transcendentals=0,
                                      bytes_accessed=int(bytes_accessed)),
    )(*args)

    out = out_flat if Lpad == HWf else out_flat[:, :, :HWf]
    # Free reshape (no transpose) back to NCHW.
    return out.reshape(N, Cout, Hout, Wout)


def _reference(x_nchw, w_dw, w_pw, bn1, bn2, *, stride, padding):
    """Pure-JAX reference (lax convs) for correctness checking."""
    eps = 1e-5
    Cin = x_nchw.shape[1]
    dw = lax.conv_general_dilated(
        x_nchw, w_dw, window_strides=(stride, stride),
        padding=[(padding, padding), (padding, padding)],
        feature_group_count=Cin,
        dimension_numbers=("NCHW", "OIHW", "NCHW"))
    g1, be1, m1, v1 = bn1
    h = (dw - m1[None, :, None, None]) / jnp.sqrt(v1[None, :, None, None] + eps)
    h = h * g1[None, :, None, None] + be1[None, :, None, None]
    h = jnp.maximum(h, 0.0)
    pw = lax.conv_general_dilated(
        h, w_pw, window_strides=(1, 1), padding=[(0, 0), (0, 0)],
        dimension_numbers=("NCHW", "OIHW", "NCHW"))
    g2, be2, m2, v2 = bn2
    y = (pw - m2[None, :, None, None]) / jnp.sqrt(v2[None, :, None, None] + eps)
    y = y * g2[None, :, None, None] + be2[None, :, None, None]
    return jnp.maximum(y, 0.0)


if __name__ == "__main__":
    # mobileConv(inp=4, oup=8, kernel_size=3, stride=1, padding=1, bias=False)
    N, Cin, H, W = 2, 4, 16, 16
    Cout, K, stride, padding = 8, 3, 1, 1

    key = jax.random.PRNGKey(0)
    kx, kdw, kpw = jax.random.split(key, 3)
    x = jax.random.normal(kx, (N, Cin, H, W), jnp.float32)
    w_dw = jax.random.normal(kdw, (Cin, 1, K, K), jnp.float32) * 0.5     # conv_1
    w_pw = jax.random.normal(kpw, (Cout, Cin, 1, 1), jnp.float32) * 0.5  # conv_2

    # Deterministic, slightly non-trivial BatchNorm parameters / running stats.
    bn1 = (1.0 + 0.10 * jnp.arange(Cin, dtype=jnp.float32),
           0.05 * jnp.arange(Cin, dtype=jnp.float32),
           0.02 * jnp.arange(Cin, dtype=jnp.float32),
           1.0 + 0.03 * jnp.arange(Cin, dtype=jnp.float32))
    bn2 = (1.0 + 0.10 * jnp.arange(Cout, dtype=jnp.float32),
           0.05 * jnp.arange(Cout, dtype=jnp.float32),
           0.02 * jnp.arange(Cout, dtype=jnp.float32),
           1.0 + 0.03 * jnp.arange(Cout, dtype=jnp.float32))

    ref = _reference(x, w_dw, w_pw, bn1, bn2, stride=stride, padding=padding)
    Hout = (H + 2 * padding - K) // stride + 1
    Wout = (W + 2 * padding - K) // stride + 1

    # f32 depthwise path (default; required on v5e) -- tight tolerance.
    out = mobile_conv(x, w_dw, w_pw, bn1, bn2, stride=stride, padding=padding,
                      compute_dtype=jnp.float32)
    jax.block_until_ready(out)
    assert out.shape == (N, Cout, Hout, Wout)
    assert jnp.allclose(out, ref, atol=1e-4, rtol=1e-4)

    # bf16 depthwise path (v6e/v7x packed-VALU fast path) -- loose tolerance.
    out_bf16 = mobile_conv(x, w_dw, w_pw, bn1, bn2, stride=stride,
                           padding=padding, compute_dtype=jnp.bfloat16)
    jax.block_until_ready(out_bf16)
    err = jnp.abs(out_bf16 - ref)
    assert float(jnp.mean(err)) < 5e-2
    assert jnp.allclose(out_bf16, ref, atol=3e-1, rtol=1e-1)

    print("KERNEL_OK")
</pallas_src>

<mosaic_0001>
module attributes {stable_mosaic.version = 11 : i64} {
  func.func @_mobileconv_flat_kernel(%arg0: i32, %arg1: memref<1x4x256xf32, #tpu.memory_space<vmem>>, %arg2: memref<4x9xf32, #tpu.memory_space<vmem>>, %arg3: memref<9x256xf32, #tpu.memory_space<vmem>>, %arg4: memref<4x1xf32, #tpu.memory_space<vmem>>, %arg5: memref<8x4xf32, #tpu.memory_space<vmem>>, %arg6: memref<8x1xf32, #tpu.memory_space<vmem>>, %arg7: memref<1x8x256xf32, #tpu.memory_space<vmem>>) attributes {dimension_semantics = [#tpu.dimension_semantics<parallel>], iteration_bounds = array<i64: 2>, scalar_prefetch = 0 : i64, scratch_operands = 0 : i64, tpu.core_type = #tpu.core_type<tc>, window_params = [{transform_indices = @transform_0, window_bounds = array<i64: 1, 4, 256>}, {pipeline_mode = #tpu.pipeline_mode<synchronous>, transform_indices = @transform_1, window_bounds = array<i64: 4, 9>}, {pipeline_mode = #tpu.pipeline_mode<synchronous>, transform_indices = @transform_2, window_bounds = array<i64: 9, 256>}, {pipeline_mode = #tpu.pipeline_mode<synchronous>, transform_indices = @transform_3, window_bounds = array<i64: 4, 1>}, {pipeline_mode = #tpu.pipeline_mode<synchronous>, transform_indices = @transform_4, window_bounds = array<i64: 8, 4>}, {pipeline_mode = #tpu.pipeline_mode<synchronous>, transform_indices = @transform_5, window_bounds = array<i64: 8, 1>}, {transform_indices = @transform_6, window_bounds = array<i64: 1, 8, 256>}]} {
    %c0 = arith.constant 0 : index
    %c0_0 = arith.constant 0 : index
    %c0_1 = arith.constant 0 : index
    %0 = vector.load %arg1[%c0, %c0_0, %c0_1] : memref<1x4x256xf32, #tpu.memory_space<vmem>>, vector<1x4x256xf32>
    %1 = vector.shape_cast %0 : vector<1x4x256xf32> to vector<4x256xf32>
    %c0_2 = arith.constant 0 : index
    %c0_3 = arith.constant 0 : index
    %2 = vector.load %arg2[%c0_2, %c0_3] : memref<4x9xf32, #tpu.memory_space<vmem>>, vector<4x9xf32>
    %c0_4 = arith.constant 0 : index
    %c0_5 = arith.constant 0 : index
    %3 = vector.load %arg3[%c0_4, %c0_5] : memref<9x256xf32, #tpu.memory_space<vmem>>, vector<9x256xf32>
    %c0_6 = arith.constant 0 : index
    %c0_7 = arith.constant 0 : index
    %4 = vector.load %arg5[%c0_6, %c0_7] : memref<8x4xf32, #tpu.memory_space<vmem>>, vector<8x4xf32>
    %cst = arith.constant 0.000000e+00 : f32
    %5 = vector.broadcast %cst : f32 to vector<4x256xf32>
    %c17_i32 = arith.constant 17 : i32
    %6 = tpu.dynamic_rotate %1 by %c17_i32 dim 1 : vector<4x256xf32>, i32 -> vector<4x256xf32>
    %7 = vector.extract_strided_slice %2 {offsets = [0, 0], sizes = [4, 1], strides = [1, 1]} : vector<4x9xf32> to vector<4x1xf32>
    %8 = vector.broadcast %7 : vector<4x1xf32> to vector<4x256xf32>
    %9 = arith.mulf %6, %8 : vector<4x256xf32>
    %10 = vector.extract_strided_slice %3 {offsets = [0, 0], sizes = [1, 256], strides = [1, 1]} : vector<9x256xf32> to vector<1x256xf32>
    %11 = vector.broadcast %10 : vector<1x256xf32> to vector<4x256xf32>
    %12 = arith.mulf %9, %11 : vector<4x256xf32>
    %13 = arith.addf %5, %12 : vector<4x256xf32>
    %c16_i32 = arith.constant 16 : i32
    %14 = tpu.dynamic_rotate %1 by %c16_i32 dim 1 : vector<4x256xf32>, i32 -> vector<4x256xf32>
    %15 = vector.extract_strided_slice %2 {offsets = [0, 1], sizes = [4, 1], strides = [1, 1]} : vector<4x9xf32> to vector<4x1xf32>
    %16 = vector.broadcast %15 : vector<4x1xf32> to vector<4x256xf32>
    %17 = arith.mulf %14, %16 : vector<4x256xf32>
    %18 = vector.extract_strided_slice %3 {offsets = [1, 0], sizes = [1, 256], strides = [1, 1]} : vector<9x256xf32> to vector<1x256xf32>
    %19 = vector.broadcast %18 : vector<1x256xf32> to vector<4x256xf32>
    %20 = arith.mulf %17, %19 : vector<4x256xf32>
    %21 = arith.addf %13, %20 : vector<4x256xf32>
    %c15_i32 = arith.constant 15 : i32
    %22 = tpu.dynamic_rotate %1 by %c15_i32 dim 1 : vector<4x256xf32>, i32 -> vector<4x256xf32>
    %23 = vector.extract_strided_slice %2 {offsets = [0, 2], sizes = [4, 1], strides = [1, 1]} : vector<4x9xf32> to vector<4x1xf32>
    %24 = vector.broadcast %23 : vector<4x1xf32> to vector<4x256xf32>
    %25 = arith.mulf %22, %24 : vector<4x256xf32>
    %26 = vector.extract_strided_slice %3 {offsets = [2, 0], sizes = [1, 256], strides = [1, 1]} : vector<9x256xf32> to vector<1x256xf32>
    %27 = vector.broadcast %26 : vector<1x256xf32> to vector<4x256xf32>
    %28 = arith.mulf %25, %27 : vector<4x256xf32>
    %29 = arith.addf %21, %28 : vector<4x256xf32>
    %c1_i32 = arith.constant 1 : i32
    %30 = tpu.dynamic_rotate %1 by %c1_i32 dim 1 : vector<4x256xf32>, i32 -> vector<4x256xf32>
    %31 = vector.extract_strided_slice %2 {offsets = [0, 3], sizes = [4, 1], strides = [1, 1]} : vector<4x9xf32> to vector<4x1xf32>
    %32 = vector.broadcast %31 : vector<4x1xf32> to vector<4x256xf32>
    %33 = arith.mulf %30, %32 : vector<4x256xf32>
    %34 = vector.extract_strided_slice %3 {offsets = [3, 0], sizes = [1, 256], strides = [1, 1]} : vector<9x256xf32> to vector<1x256xf32>
    %35 = vector.broadcast %34 : vector<1x256xf32> to vector<4x256xf32>
    %36 = arith.mulf %33, %35 : vector<4x256xf32>
    %37 = arith.addf %29, %36 : vector<4x256xf32>
    %38 = vector.extract_strided_slice %2 {offsets = [0, 4], sizes = [4, 1], strides = [1, 1]} : vector<4x9xf32> to vector<4x1xf32>
    %39 = vector.broadcast %38 : vector<4x1xf32> to vector<4x256xf32>
    %40 = arith.mulf %1, %39 : vector<4x256xf32>
    %41 = arith.addf %37, %40 : vector<4x256xf32>
    %c255_i32 = arith.constant 255 : i32
    %42 = tpu.dynamic_rotate %1 by %c255_i32 dim 1 : vector<4x256xf32>, i32 -> vector<4x256xf32>
    %43 = vector.extract_strided_slice %2 {offsets = [0, 5], sizes = [4, 1], strides = [1, 1]} : vector<4x9xf32> to vector<4x1xf32>
    %44 = vector.broadcast %43 : vector<4x1xf32> to vector<4x256xf32>
    %45 = arith.mulf %42, %44 : vector<4x256xf32>
    %46 = vector.extract_strided_slice %3 {offsets = [5, 0], sizes = [1, 256], strides = [1, 1]} : vector<9x256xf32> to vector<1x256xf32>
    %47 = vector.broadcast %46 : vector<1x256xf32> to vector<4x256xf32>
    %48 = arith.mulf %45, %47 : vector<4x256xf32>
    %49 = arith.addf %41, %48 : vector<4x256xf32>
    %c241_i32 = arith.constant 241 : i32
    %50 = tpu.dynamic_rotate %1 by %c241_i32 dim 1 : vector<4x256xf32>, i32 -> vector<4x256xf32>
    %51 = vector.extract_strided_slice %2 {offsets = [0, 6], sizes = [4, 1], strides = [1, 1]} : vector<4x9xf32> to vector<4x1xf32>
    %52 = vector.broadcast %51 : vector<4x1xf32> to vector<4x256xf32>
    %53 = arith.mulf %50, %52 : vector<4x256xf32>
    %54 = vector.extract_strided_slice %3 {offsets = [6, 0], sizes = [1, 256], strides = [1, 1]} : vector<9x256xf32> to vector<1x256xf32>
    %55 = vector.broadcast %54 : vector<1x256xf32> to vector<4x256xf32>
    %56 = arith.mulf %53, %55 : vector<4x256xf32>
    %57 = arith.addf %49, %56 : vector<4x256xf32>
    %c240_i32 = arith.constant 240 : i32
    %58 = tpu.dynamic_rotate %1 by %c240_i32 dim 1 : vector<4x256xf32>, i32 -> vector<4x256xf32>
    %59 = vector.extract_strided_slice %2 {offsets = [0, 7], sizes = [4, 1], strides = [1, 1]} : vector<4x9xf32> to vector<4x1xf32>
    %60 = vector.broadcast %59 : vector<4x1xf32> to vector<4x256xf32>
    %61 = arith.mulf %58, %60 : vector<4x256xf32>
    %62 = vector.extract_strided_slice %3 {offsets = [7, 0], sizes = [1, 256], strides = [1, 1]} : vector<9x256xf32> to vector<1x256xf32>
    %63 = vector.broadcast %62 : vector<1x256xf32> to vector<4x256xf32>
    %64 = arith.mulf %61, %63 : vector<4x256xf32>
    %65 = arith.addf %57, %64 : vector<4x256xf32>
    %c239_i32 = arith.constant 239 : i32
    %66 = tpu.dynamic_rotate %1 by %c239_i32 dim 1 : vector<4x256xf32>, i32 -> vector<4x256xf32>
    %67 = vector.extract_strided_slice %2 {offsets = [0, 8], sizes = [4, 1], strides = [1, 1]} : vector<4x9xf32> to vector<4x1xf32>
    %68 = vector.broadcast %67 : vector<4x1xf32> to vector<4x256xf32>
    %69 = arith.mulf %66, %68 : vector<4x256xf32>
    %70 = vector.extract_strided_slice %3 {offsets = [8, 0], sizes = [1, 256], strides = [1, 1]} : vector<9x256xf32> to vector<1x256xf32>
    %71 = vector.broadcast %70 : vector<1x256xf32> to vector<4x256xf32>
    %72 = arith.mulf %69, %71 : vector<4x256xf32>
    %73 = arith.addf %65, %72 : vector<4x256xf32>
    %c0_8 = arith.constant 0 : index
    %c0_9 = arith.constant 0 : index
    %74 = vector.load %arg4[%c0_8, %c0_9] : memref<4x1xf32, #tpu.memory_space<vmem>>, vector<4x1xf32>
    %75 = vector.broadcast %74 : vector<4x1xf32> to vector<4x256xf32>
    %76 = arith.addf %73, %75 : vector<4x256xf32>
    %cst_10 = arith.constant 0.000000e+00 : f32
    %77 = vector.broadcast %cst_10 : f32 to vector<4x256xf32>
    %78 = arith.maximumf %76, %77 : vector<4x256xf32>
    %cst_11 = arith.constant 0.000000e+00 : f32
    %79 = vector.broadcast %cst_11 : f32 to vector<8x256xf32>
    %80 = vector.extract_strided_slice %4 {offsets = [0, 0], sizes = [8, 1], strides = [1, 1]} : vector<8x4xf32> to vector<8x1xf32>
    %81 = vector.extract_strided_slice %78 {offsets = [0, 0], sizes = [1, 256], strides = [1, 1]} : vector<4x256xf32> to vector<1x256xf32>
    %82 = vector.broadcast %80 : vector<8x1xf32> to vector<8x256xf32>
    %83 = vector.broadcast %81 : vector<1x256xf32> to vector<8x256xf32>
    %84 = arith.mulf %82, %83 : vector<8x256xf32>
    %85 = arith.addf %79, %84 : vector<8x256xf32>
    %86 = vector.extract_strided_slice %4 {offsets = [0, 1], sizes = [8, 1], strides = [1, 1]} : vector<8x4xf32> to vector<8x1xf32>
    %87 = vector.extract_strided_slice %78 {offsets = [1, 0], sizes = [1, 256], strides = [1, 1]} : vector<4x256xf32> to vector<1x256xf32>
    %88 = vector.broadcast %86 : vector<8x1xf32> to vector<8x256xf32>
    %89 = vector.broadcast %87 : vector<1x256xf32> to vector<8x256xf32>
    %90 = arith.mulf %88, %89 : vector<8x256xf32>
    %91 = arith.addf %85, %90 : vector<8x256xf32>
    %92 = vector.extract_strided_slice %4 {offsets = [0, 2], sizes = [8, 1], strides = [1, 1]} : vector<8x4xf32> to vector<8x1xf32>
    %93 = vector.extract_strided_slice %78 {offsets = [2, 0], sizes = [1, 256], strides = [1, 1]} : vector<4x256xf32> to vector<1x256xf32>
    %94 = vector.broadcast %92 : vector<8x1xf32> to vector<8x256xf32>
    %95 = vector.broadcast %93 : vector<1x256xf32> to vector<8x256xf32>
    %96 = arith.mulf %94, %95 : vector<8x256xf32>
    %97 = arith.addf %91, %96 : vector<8x256xf32>
    %98 = vector.extract_strided_slice %4 {offsets = [0, 3], sizes = [8, 1], strides = [1, 1]} : vector<8x4xf32> to vector<8x1xf32>
    %99 = vector.extract_strided_slice %78 {offsets = [3, 0], sizes = [1, 256], strides = [1, 1]} : vector<4x256xf32> to vector<1x256xf32>
    %100 = vector.broadcast %98 : vector<8x1xf32> to vector<8x256xf32>
    %101 = vector.broadcast %99 : vector<1x256xf32> to vector<8x256xf32>
    %102 = arith.mulf %100, %101 : vector<8x256xf32>
    %103 = arith.addf %97, %102 : vector<8x256xf32>
    %c0_12 = arith.constant 0 : index
    %c0_13 = arith.constant 0 : index
    %104 = vector.load %arg6[%c0_12, %c0_13] : memref<8x1xf32, #tpu.memory_space<vmem>>, vector<8x1xf32>
    %105 = vector.broadcast %104 : vector<8x1xf32> to vector<8x256xf32>
    %106 = arith.addf %103, %105 : vector<8x256xf32>
    %cst_14 = arith.constant 0.000000e+00 : f32
    %107 = vector.broadcast %cst_14 : f32 to vector<8x256xf32>
    %108 = arith.maximumf %106, %107 : vector<8x256xf32>
    %c0_15 = arith.constant 0 : index
    %c0_16 = arith.constant 0 : index
    %c0_17 = arith.constant 0 : index
    %109 = vector.load %arg7[%c0_15, %c0_16, %c0_17] : memref<1x8x256xf32, #tpu.memory_space<vmem>>, vector<1x8x256xf32>
    %110 = vector.shape_cast %109 : vector<1x8x256xf32> to vector<8x256xf32>
    %111 = vector.shape_cast %108 : vector<8x256xf32> to vector<1x8x256xf32>
    tpu.vector_store %arg7[%c0_15, %c0_16, %c0_17], %111 {strides = array<i32>} : memref<1x8x256xf32, #tpu.memory_space<vmem>>, vector<1x8x256xf32>,
    return
  }
  func.func @transform_0(%arg0: i32) -> (i32, i32, i32) {
    %c0_i32 = arith.constant 0 : i32
    %c0_i32_0 = arith.constant 0 : i32
    %c0_i32_1 = arith.constant 0 : i32
    return %arg0, %c0_i32, %c0_i32_0 : i32, i32, i32
  }
  func.func @transform_1(%arg0: i32) -> (i32, i32) {
    %c0_i32 = arith.constant 0 : i32
    %c0_i32_0 = arith.constant 0 : i32
    %c0_i32_1 = arith.constant 0 : i32
    return %c0_i32, %c0_i32_0 : i32, i32
  }
  func.func @transform_2(%arg0: i32) -> (i32, i32) {
    %c0_i32 = arith.constant 0 : i32
    %c0_i32_0 = arith.constant 0 : i32
    %c0_i32_1 = arith.constant 0 : i32
    return %c0_i32, %c0_i32_0 : i32, i32
  }
  func.func @transform_3(%arg0: i32) -> (i32, i32) {
    %c0_i32 = arith.constant 0 : i32
    %c0_i32_0 = arith.constant 0 : i32
    %c0_i32_1 = arith.constant 0 : i32
    return %c0_i32, %c0_i32_0 : i32, i32
  }
  func.func @transform_4(%arg0: i32) -> (i32, i32) {
    %c0_i32 = arith.constant 0 : i32
    %c0_i32_0 = arith.constant 0 : i32
    %c0_i32_1 = arith.constant 0 : i32
    return %c0_i32, %c0_i32_0 : i32, i32
  }
  func.func @transform_5(%arg0: i32) -> (i32, i32) {
    %c0_i32 = arith.constant 0 : i32
    %c0_i32_0 = arith.constant 0 : i32
    %c0_i32_1 = arith.constant 0 : i32
    return %c0_i32, %c0_i32_0 : i32, i32
  }
  func.func @transform_6(%arg0: i32) -> (i32, i32, i32) {
    %c0_i32 = arith.constant 0 : i32
    %c0_i32_0 = arith.constant 0 : i32
    %c0_i32_1 = arith.constant 0 : i32
    return %arg0, %c0_i32, %c0_i32_0 : i32, i32, i32
  }
}

</mosaic_0001>

<bundles_post_ra>
// kernel: tpu_custom_call.1
= control target key start
LH: loop header
LB: loop body
LE: loop exit
PB: predicated region body
PF: predicated region fallthrough
CT: control target
= control target key end

     0   :  { %11 = vsyncpa [#allocation3], 0  ;;  %s1307_s0 = inlined_call_operand.hbm [shape: f32[2,4,256], index: 0, kind: input, shape index: {}]   ;;  %s1308_s1 = inlined_call_operand.hbm [shape: f32[4,9], index: 1, kind: input, shape index: {}]   ;;  %s1309_s2 = inlined_call_operand.vmem [shape: f32[9,256], index: 2, kind: input, shape index: {}]   ;;  %s1310_s3 = inlined_call_operand.vmem [shape: f32[4,1], index: 3, kind: input, shape index: {}]   ;;  %s1311_s4 = inlined_call_operand.vmem [shape: f32[8,4], index: 4, kind: input, shape index: {}]   ;;  %s1312_s5 = inlined_call_operand.vmem [shape: f32[8,1], index: 5, kind: input, shape index: {}]   ;;  %s1313_s6 = inlined_call_operand.hbm [shape: f32[2,8,256], index: 6, kind: output, shape index: {}]  }
   0x1   :  { %13 = vsyncpa [#allocation3 + $0x1], 0 }
   0x2   :  { %14 = vsyncpa [#allocation6], 0 }
   0x3   :  { %15 = vsyncpa [#allocation4], 0 }
   0x4   :  { %17 = vsyncpa [#allocation4 + $0x1], 0  ;;  %s990_s21 = smov 0   ;;  %s992_s22 = smov 0  }
   0x5   :  { %s994_s23 = smov 0   ;;  %s996_s24 = smov 0  }
   0x6 LB: > { %s1011_s25 = sadd.s32 4294967295, %s932_s24   ;;  %s693_s26 = sadd.s32 4294967294, %s932_s24   ;;  %s932_s24 = sphi %s996_s24, %s1337_s24   ;;  %s928_s23 = sphi %s994_s23, %s1336_s23   ;;  %s924_s22 = sphi %s992_s22, %s1335_s22   ;;  %s920_s21 = sphi %s990_s21, %s1334_s21  }
   0x7   : > { %p43_p0 = scmp.ne.s32.totalorder %s924_s22, %s920_s21  ;;  %p1314_p1 = scmp.eq.s32.totalorder %s1011_s25, 0 }
   0x8   : > { %p178_p3 = scmp.eq.s32.totalorder %s693_s26, 1  ;;  %p694_p5 = scmp.ge.s32.totalorder %s932_s24, 1 }
   0x9   : > { %p1020_p4 = por %p1314_p1, %p43_p0  ;;  %p185_p7 = scmp.lt.s32.totalorder %s932_s24, 3 }
   0xa   : > { %p1025_p6 = por %p178_p3, %p43_p0  ;;  %s934_s30 = smov [#allocation5]  }
   0xb   : > { %s1317_s27 = scalar_select %p1020_p4, 1, 0 }
   0xc   : > { %s1318_s28 = scalar_select %p1025_p6, 1, 0 }
   0xd   : > { %p1030_p8 = pnand %p694_p5, %p185_p7  ;;  %s198_s7 = sshll.u32 %s934_s30, 4  ;;  %s199_s7 = int_to_ptr.vmem [resolvable:$true] %s198_s7 }
   0xe   : > { %s1038_s8 = sadd.s32 1, %s932_s24   ;;  %s30_s12 = sadd.s32 1, %s928_s23 }
   0xf   : > { %s1319_s29 = scalar_select %p1030_p8, 1, 0 }
  0x10   : > { %p721_p10 = pneg %p1030_p8  ;;  %s27_s10 = ssub.s32 %s932_s24, %s1038_s8 }
  0x11   : > { %p1048_p12 = scmp.eq.s32.totalorder %s27_s10, 0  ;;  %s804_s15 = scalar_lea.hbm %s1308_s1, 64 }
  0x12   : > { %p1042_p11 = pnand %p721_p10, %p1314_p1  ;;  %p805_p0 = scmp.ne.s32.totalorder %s1308_s1, %s804_s15 }
  0x13   : > { %s1321_s11 = scalar_select %p1048_p12, 1, 0 }
  0x14   : > { %p806_p3 = pneg %p1042_p11  ;;  %p811_p10 = scmp.lt.u32.totalorder %s804_s15, %s1308_s1 }
  0x16   : > { %p807_p5 = pnand %p806_p3, %p805_p0 }
  0x18   : > { %p808_p7 = pneg %p807_p5 }
  0x1a   : > { %p813_p9 = pnand %p811_p10, %p808_p7 }
  0x1c   : > { %816 = shalt.err (!%p813_p9)
}
  0x1d   : > { %s817_s20 = scalar_lea.vmem %s199_s7, 64  ;;  %p825_p6 = scmp.lt.s32.totalorder %s199_s7, %s199_s7 }
  0x1e   : > { %p818_p1 = scmp.ne.s32.totalorder %s199_s7, %s817_s20  ;;  %p826_p4 = scmp.lt.s32.totalorder %s817_s20, %s817_s20 }
  0x20   : > { %p820_p2 = pnand %p818_p1, %p806_p3  ;;  %p827_p8 = por %p826_p4, %p825_p6 }
  0x22   : > { %p821_p13 = pneg %p820_p2 }
  0x24   : > { %p828_p12 = pnand %p827_p8, %p821_p13 }
  0x26   : > { %831 = shalt.err (!%p828_p12)
}
  0x27   : > { %724 = dma.hbm_to_vmem [thread:$0]  (!%p1042_p11), %s1308_s1, 64, %s199_s7, [#allocation6]  }
  0x28   : > { %p1322_p1 = scmp.ne.s32.totalorder %s1321_s11, 0  ;;  %p38_p2 = scmp.eq.s32.totalorder %s932_s24, 0 }
  0x29   : > { %p1323_p4 = scmp.ne.s32.totalorder %s928_s23, %s924_s22  ;;  %p1324_p6 = scmp.eq.s32.totalorder %s1011_s25, 1 }
  0x2a   : > { %s1074_s10 = scalar_select %p1322_p1, %s928_s23, %s30_s12  }
  0x2b   : > { %p1082_p8 = por %p1324_p6, %p1323_p4  ;;  %p734_p9 = scmp.lt.s32.totalorder %s932_s24, 2 }
  0x2c   : > { %s221_s13 = sand.u32 1, %s928_s23   ;;  %p1326_p12 = pmov %p1323_p4 }
  0x2d   : > { %s697_s14 = sshll.u32 %s221_s13, 3  ;;  %s711_s15 = sshll.u32 %s932_s24, 7 }
  0x2e   : > { %p39_p13 = por %p38_p2, %p1326_p12  ;;  %s1095_s7 = scalar_lea.hbm %s1307_s0, %s711_s15 }
  0x2f   : > { %s225_s11 = scalar_lea.vmem [#allocation2], %s697_s14  ;;  %s222_s19 = scalar_lea.sflag [#allocation3], %s221_s13 }
  0x30   : > { %s233_s12 = sshll.u32 %s225_s11, 4  ;;  %p1097_p11 = pnand %p734_p9, %p39_p13  ;;  %s1101_s12 = int_to_ptr.vmem [resolvable:$true] %s233_s12 }
  0x31   : > { %s832_s20 = scalar_lea.hbm %s1095_s7, 128  ;;  %s837_s14 = scalar_lea.hbm %s1307_s0, 256 }
  0x32   : > { %p833_p0 = scmp.ne.s32.totalorder %s1095_s7, %s832_s20  ;;  %p834_p3 = pneg %p1097_p11 }
  0x33   : > { %p838_p10 = scmp.lt.u32.totalorder %s1095_s7, %s1307_s0  ;;  %p839_p1 = scmp.lt.u32.totalorder %s837_s14, %s832_s20 }
  0x34   : > { %p835_p5 = pnand %p834_p3, %p833_p0  ;;  %p841_p4 = scmp.lt.u32.totalorder %s832_s20, %s1095_s7 }
  0x35   : > { %p840_p2 = por %p839_p1, %p838_p10 }
  0x36   : > { %p836_p7 = pneg %p835_p5 }
  0x37   : > { %p842_p6 = por %p841_p4, %p840_p2 }
  0x39   : > { %p843_p9 = pnand %p842_p6, %p836_p7 }
  0x3b   : > { %846 = shalt.err (!%p843_p9)
}
  0x3c   : > { %s847_s13 = scalar_lea.vmem %s1101_s12, 128  ;;  %s935_s17 = smov [#allocation2]  }
  0x3d   : > { %p848_p12 = scmp.ne.s32.totalorder %s1101_s12, %s847_s13  ;;  %s852_s11 = sshll.u32 %s935_s17, 4  ;;  %s853_s11 = int_to_ptr.vmem [resolvable:$false] %s852_s11 }
  0x3e   : > { %s854_s26 = scalar_lea.vmem %s853_s11, 256  ;;  %p855_p5 = scmp.lt.s32.totalorder %s1101_s12, %s853_s11 }
  0x3f   : > { %p850_p13 = pnand %p848_p12, %p834_p3  ;;  %p856_p10 = scmp.lt.s32.totalorder %s854_s26, %s847_s13 }
  0x41   : > { %p851_p0 = pneg %p850_p13  ;;  %p857_p1 = por %p856_p10, %p855_p5 }
  0x43   : > { %p858_p2 = pnand %p857_p1, %p851_p0 }
  0x45   : > { %861 = shalt.err (!%p858_p2)
}
  0x46   : > { %728 = dma.hbm_to_vmem [thread:$0]  (!%p1097_p11), %s1095_s7, 128, %s1101_s12, %s222_s19  }
  0x47   : > { %p1328_p7 = scmp.ne.s32.totalorder %s1319_s29, 0 }
  0x48   : > { %s1131_s20 = sand.u32 (!%p1328_p7), 1, %s924_s22   ;;  %p1329_p3 = scmp.ne.s32.totalorder (!%p1328_p7), %s1317_s27, 0 }
  0x49   : > { %242 = sbr.rel (%p1328_p7) target bundleno = 307 (0x133), region = 44  ;;  %s701_s30 = sshll.u32 (!%p1328_p7), %s1131_s20, 3 }
  0x4a   : > { %s245_s14 = scalar_lea.sflag (!%p1328_p7), [#allocation3], %s1131_s20  ;;  %s248_s15 = scalar_lea.vmem (!%p1328_p7), [#allocation2], %s701_s30 }
  0x50   : > { %907 = dma.done.wait (%p1329_p3), %s245_s14, 128  }
  0x51   : > { %909 = vsyncadd (%p1329_p3), %s245_s14, 4294967168  ;;  %p1330_p4 = scmp.eq.s32.totalorder %s1011_s25, 0 }
  0x53   : > { %911 = dma.done.wait (%p1330_p4), [#allocation6], 64   ;;  %p1331_p11 = pmov %p1330_p4 }
  0x54   : > { %v936_v0 = vmov 2   ;;  %v937_v1 = vmov 1   ;;  %v282_v2 = vld [vmem:[#allocation5] sm:$0xf]  ;;  %v1143_v3 = vld [vmem:[%s248_s15] sm:$0xff]  ;;  %v938_v4 = vmov 3   ;;  %v295_v25 = vlaneseq }
  0x55   : > { %913 = vsyncadd (%p1331_p11), [#allocation6], 4294967232  ;;  %789 = vset.pattern.permute.xlu1 %v936_v0  ;;  %788 = vset.pattern.permute.xlu0 %v937_v1  ;;  %s939_s29 = smov 17   ;;  %v940_v5 = vmov 5   ;;  %s941_s27 = smov 16   ;;  %v942_v6 = vmov 4   ;;  %v289_v7 = vcombine.high %v1143_v3, %v1143_v3 }
  0x56   : > { %352 = vperm.xlu1 %789, %v282_v2   ;;  %327 = vperm.xlu0 %788, %v282_v2   ;;  %s943_s7 = smov 15   ;;  %v944_v8 = vmov 7   ;;  %v945_v9 = vmov 6   ;;  %v946_v10 = vmov 0   ;;  %s947_s12 = smov 1   ;;  %v951_v11 = vmov 8  }
  0x57   : > { %s948_s18 = smov 127   ;;  %s949_s19 = smov 113   ;;  %v511_v12 = vld [vmem:[%s1310_s3] sm:$0xf]  ;;  %v1170_v27 = vand.u32 127, %v295_v25  ;;  %v1172_v29 = vshrl.u32 %v295_v25, 7 }
  0x58   : > { %s950_s16 = smov 112   ;;  %s952_s13 = smov 111   ;;  %v287_v13 = vld [vmem:[%s1311_s4] sm:$0xff]  ;;  %v953_v34 = vmov 839922192   ;;  %v1190_v37 = vld [vmem:[%s1309_s2 + $0x8] sm:$0xff] }
  0x59   : > { %v586_v14 = vld [vmem:[%s1312_s5] sm:$0xff]  ;;  %vm323_vm0 = vcmp.lt.s32.totalorder %v1170_v27, 16  ;;  %vm297_vm1 = vcmp.lt.s32.totalorder %v1170_v27, 17  ;;  %v1177_v30 = vsub.s32 0, %v1172_v29  ;;  %v1180_v32 = vsub.s32 1, %v1172_v29  ;;  %s703_s17 = sshll.u32 %s1131_s20, 4 }
  0x5a   : > { %790 = vset.pattern.permute.xlu1 %v938_v4  ;;  %291 = vrot.lane.b32.xlu0 %v1143_v3, %s939_s29  ;;  %v398_v35 = vunpack.c.l.s4 %v953_v34  ;;  %v1185_v36 = vld [vmem:[%s1309_s2] sm:$0xff]  ;;  %vm348_vm2 = vcmp.lt.s32.totalorder %v1170_v27, 15  ;;  %v1194_v42 = vsub.s32 2, %v1172_v29  ;;  %vm373_vm3 = vcmp.lt.s32.totalorder %v1170_v27, 1  ;;  %s712_s11 = sshll.u32 %s1011_s25, 8  ;;  %s280_s26 = scalar_lea.vmem [#allocation7], %s703_s17 }
  0x5b   : > { %377 = vperm.xlu1 %790, %v282_v2   ;;  %792 = vset.pattern.permute.xlu0 %v940_v5  ;;  %v310_v43 = vrot.slane %v1185_v36, %v1177_v30  ;;  %v314_v44 = vrot.slane %v1190_v37, %v1177_v30  ;;  %v335_v48 = vrot.slane %v1185_v36, %v1180_v32  ;;  %v1212_v62 = vsub.s32 3, %v1172_v29  ;;  %s613_s30 = sshll.u32 %s280_s26, 4  ;;  %s1265_s30 = int_to_ptr.vmem [resolvable:$true] %s613_s30 }
  0x5c   : > { %v339_v49 = vrot.slane %v1190_v37, %v1180_v32  ;;  %v399_v52 = vunpack.c.0.s8 %v398_v35  ;;  %v360_v55 = vrot.slane %v1185_v36, %v1194_v42  ;;  %v364_v61 = vrot.slane %v1190_v37, %v1194_v42  ;;  %s862_s25 = scalar_lea.vmem %s1265_s30, 256 }
  0x5d   : > { %vm415_vm4 = vcmp.lt.s32.totalorder %v1170_v27, 127  ;;  %vm440_vm5 = vcmp.lt.s32.totalorder %v1170_v27, 113  ;;  %vm465_vm6 = vcmp.lt.s32.totalorder %v1170_v27, 112  ;;  %vm490_vm7 = vcmp.lt.s32.totalorder %v1170_v27, 111  ;;  %p863_p6 = scmp.ne.s32.totalorder %s1265_s30, %s862_s25 }
  0x5e   : > { %319 = vrot.lane.b32.xlu0 %v1143_v3, %s941_s27  ;;  %v402_v5 = vsub.s32 %v399_v52, %v1172_v29 }
  0x5f   : > { %791 = vset.pattern.permute.xlu1 %v942_v6  ;;  %p864_p9 = pnand %p863_p6, %p1082_p8 }
  0x60   : > { %395 = vperm.xlu1 %791, %v282_v2  }
  0x61   : > { %p865_p12 = pneg %p864_p9 }
  0x62   : > { %344 = vrot.lane.b32.xlu0 %v1143_v3, %s943_s7 }
  0x64   : > { %293 = vrot.lane.b32.xlu1 %v289_v7, %s939_s29  ;;  %s1263_s29 = scalar_lea.hbm %s1313_s6, %s712_s11 }
  0x65   : > { %795 = vset.pattern.permute.xlu1 %v944_v8 }
  0x66   : > { %419 = vperm.xlu0 %792, %v282_v2  }
  0x68   : > { %321 = vrot.lane.b32.xlu1 %v289_v7, %s941_s27  ;;  %s599_s27 = scalar_lea.sflag [#allocation4], %s1131_s20 }
  0x6a   : > { %793 = vset.pattern.permute.xlu0 %v945_v9  ;;  %v385_v9 = vrot.slane %v1185_v36, %v1212_v62 }
  0x6b   : > { %444 = vperm.xlu0 %793, %v282_v2  }
  0x6c   : > { %346 = vrot.lane.b32.xlu1 %v289_v7, %s943_s7  ;;  %s954_s7 = smov [#allocation7]  }
  0x6f   : > { %794 = vset.pattern.permute.xlu0 %v946_v10 }
  0x70   : > { %302 = vperm.xlu0 %794, %v282_v2   ;;  %369 = vrot.lane.b32.xlu1 %v1143_v3, %s947_s12 }
  0x74   : > { %413 = vrot.lane.b32.xlu0 %v289_v7, %s948_s18  ;;  %371 = vrot.lane.b32.xlu1 %v289_v7, %s947_s12  ;;  %s866_s12 = sshll.u32 %s954_s7, 4  ;;  %s867_s12 = int_to_ptr.vmem [resolvable:$false] %s866_s12 }
  0x75   : > { %p869_p13 = scmp.lt.s32.totalorder %s1265_s30, %s867_s12 }
  0x78   : > { %436 = vrot.lane.b32.xlu0 %v1143_v3, %s949_s19  ;;  %469 = vperm.xlu1 %795, %v282_v2  }
  0x7c   : > { %461 = vrot.lane.b32.xlu0 %v1143_v3, %s950_s16  ;;  %411 = vrot.lane.b32.xlu1 %v1143_v3, %s948_s18  ;;  %s868_s18 = scalar_lea.vmem %s867_s12, 512 }
  0x7d   : > { %796 = vset.pattern.permute.xlu1 %v951_v11  ;;  %p870_p0 = scmp.lt.s32.totalorder %s868_s18, %s862_s25 }
  0x7f   : > { %p871_p5 = por %p870_p0, %p869_p13 }
  0x80   : > { %486 = vrot.lane.b32.xlu0 %v1143_v3, %s952_s13  ;;  %494 = vperm.xlu1 %796, %v282_v2  }
  0x81   : > { %p872_p10 = pnand %p871_p5, %p865_p12 }
  0x84   : > { %514 = vperm.xlu0 %794, %v511_v12   ;;  %438 = vrot.lane.b32.xlu1 %v289_v7, %s949_s19 }
  0x85   : > { %797 = vset.pattern.permute.xlu1 %v946_v10 }
  0x88   : > { %463 = vrot.lane.b32.xlu1 %v289_v7, %s950_s16  ;;  %799 = vset.pattern.permute.xlu0 %v936_v0 }
  0x89   : > { %555 = vperm.xlu0 %799, %v287_v13  }
  0x8c   : > { %488 = vrot.lane.b32.xlu1 %v289_v7, %s952_s13 }
  0x8d   : > { %802 = vset.pattern.permute.xlu0 %v946_v10 }
  0x90   : > { %523 = vperm.xlu1 %797, %v287_v13  }
  0x94   : > { %798 = vset.pattern.permute.xlu1 %v937_v1 }
  0x95   : > { %539 = vperm.xlu1 %798, %v287_v13  }
  0x99   : > { %800 = vset.pattern.permute.xlu1 %v938_v4 }
  0x9a   : > { %571 = vperm.xlu1 %800, %v287_v13  }
  0x9e   : > { %801 = vset.pattern.permute.xlu1 %v946_v10  ;;  %v389_v10 = vrot.slane %v1190_v37, %v1212_v62 }
  0x9f   : > { %589 = vperm.xlu1 %801, %v586_v14  }
  0xd5   : > { %v353_v15 = vpop.permute.xlu1 %352  ;;  %v328_v16 = vpop.permute.xlu0 %327 }
  0xd9   : > { %v292_v17 = vpop.permute.xlu0 %291 }
  0xda   : > { %v378_v18 = vpop.permute.xlu1 %377 }
  0xdd   : > { %v320_v19 = vpop.permute.xlu0 %319 }
  0xdf   : > { %v1164_v20 = vpop.permute.xlu1 %395 }
  0xe1   : > { %v345_v21 = vpop.permute.xlu0 %344 }
  0xe3   : > { %v294_v22 = vpop.permute.xlu1 %293 }
  0xe4   : > { %v298_v40 = vsel %vm297_vm1, %v292_v17, %v294_v22  ;;  %v299_v41 = vsel %vm297_vm1, %v294_v22, %v292_v17 }
  0xe5   : > { %v1166_v23 = vpop.permute.xlu0 %419 }
  0xe7   : > { %v322_v24 = vpop.permute.xlu1 %321 }
  0xe8   : > { %v324_v38 = vsel %vm323_vm0, %v320_v19, %v322_v24  ;;  %v325_v39 = vsel %vm323_vm0, %v322_v24, %v320_v19  ;;  %v451_v24 = vsub.s32 6, %v1172_v29 }
  0xe9   : > { %v330_v50 = vmul.f32 %v328_v16, %v325_v39  ;;  %v331_v51 = vmul.f32 %v328_v16, %v324_v38  ;;  %v426_v16 = vsub.s32 5, %v1172_v29 }
  0xea   : > { %v1168_v26 = vpop.permute.xlu0 %444 }
  0xeb   : > { %v347_v28 = vpop.permute.xlu1 %346  ;;  %v340_v59 = vmul.f32 %v335_v48, %v330_v50  ;;  %v341_v60 = vmul.f32 %v339_v49, %v331_v51  ;;  %v427_v34 = vrot.slane %v1185_v36, %v426_v16  ;;  %v431_v35 = vrot.slane %v1190_v37, %v426_v16 }
  0xec   : > { %v349_v53 = vsel %vm348_vm2, %v345_v21, %v347_v28  ;;  %v350_v54 = vsel %vm348_vm2, %v347_v28, %v345_v21 }
  0xed   : > { %v355_v63 = vmul.f32 %v353_v15, %v350_v54  ;;  %v356_v0 = vmul.f32 %v353_v15, %v349_v53  ;;  %v403_v15 = vrot.slane %v1164_v20, %v402_v5  ;;  %v476_v20 = vsub.s32 7, %v1172_v29  ;;  %v705_v5 = vld [vmem:[%s1309_s2 + $0x18] ss:$0 sm:$0xff] }
  0xef   : > { %v370_v31 = vpop.permute.xlu1 %369  ;;  %v303_v33 = vpop.permute.xlu0 %302  ;;  %v365_v13 = vmul.f32 %v360_v55, %v355_v63  ;;  %v366_v14 = vmul.f32 %v364_v61, %v356_v0  ;;  %v477_v50 = vrot.slane %v1185_v36, %v476_v20  ;;  %v481_v52 = vrot.slane %v1190_v37, %v476_v20 }
  0xf0   : > { %v305_v45 = vmul.f32 %v303_v33, %v299_v41  ;;  %v306_v46 = vmul.f32 %v303_v33, %v298_v40  ;;  %v452_v40 = vrot.slane %v1185_v36, %v451_v24 }
  0xf2   : > { %v315_v56 = vmul.f32 %v310_v43, %v305_v45  ;;  %v316_v57 = vmul.f32 %v314_v44, %v306_v46 }
  0xf3   : > { %v372_v47 = vpop.permute.xlu1 %371  ;;  %v414_v1 = vpop.permute.xlu0 %413 }
  0xf4   : > { %v374_v2 = vsel %vm373_vm3, %v370_v31, %v372_v47  ;;  %v375_v4 = vsel %vm373_vm3, %v372_v47, %v370_v31  ;;  %v342_v6 = vadd.f32 %v340_v59, %v315_v56  ;;  %v343_v7 = vadd.f32 %v341_v60, %v316_v57 }
  0xf5   : > { %v380_v11 = vmul.f32 %v378_v18, %v375_v4  ;;  %v381_v12 = vmul.f32 %v378_v18, %v374_v2  ;;  %v405_v18 = vmul.f32 %v403_v15, %v1143_v3  ;;  %v456_v3 = vrot.slane %v1190_v37, %v451_v24  ;;  %v704_v37 = vld [vmem:[%s1309_s2 + $0x10] ss:$0 sm:$0xff] }
  0xf6   : > { %v367_v17 = vadd.f32 %v365_v13, %v342_v6  ;;  %v368_v19 = vadd.f32 %v366_v14, %v343_v7 }
  0xf7   : > { %v1207_v58 = vpop.permute.xlu1 %469  ;;  %v437_v21 = vpop.permute.xlu0 %436  ;;  %v390_v25 = vmul.f32 %v385_v9, %v380_v11  ;;  %v391_v28 = vmul.f32 %v389_v10, %v381_v12  ;;  %v407_v49 = vcombine.high %v405_v18, %v405_v18 }
  0xf9   : > { %v392_v43 = vadd.f32 %v390_v25, %v367_v17  ;;  %v393_v44 = vadd.f32 %v391_v28, %v368_v19 }
  0xfb   : > { %v412_v8 = vpop.permute.xlu1 %411  ;;  %v462_v47 = vpop.permute.xlu0 %461  ;;  %v409_v54 = vadd.f32 %v405_v18, %v392_v43  ;;  %v410_v55 = vadd.f32 %v407_v49, %v393_v44 }
  0xfc   : > { %v416_v31 = vsel %vm415_vm4, %v412_v8, %v414_v1  ;;  %v417_v33 = vsel %vm415_vm4, %v414_v1, %v412_v8 }
  0xfd   : > { %v422_v38 = vmul.f32 %v1166_v23, %v416_v31  ;;  %v423_v39 = vmul.f32 %v1166_v23, %v417_v33 }
  0xff   : > { %v495_v22 = vpop.permute.xlu1 %494  ;;  %v432_v23 = vmul.f32 %v427_v34, %v422_v38  ;;  %v433_v51 = vmul.f32 %v431_v35, %v423_v39  ;;  %v487_v36 = vpop.permute.xlu0 %486 }
 0x101   : > { %v434_v63 = vadd.f32 %v432_v23, %v409_v54  ;;  %v435_v0 = vadd.f32 %v433_v51, %v410_v55 }
 0x103   : > { %v439_v41 = vpop.permute.xlu1 %438  ;;  %v515_v19 = vpop.permute.xlu0 %514 }
 0x104   : > { %v441_v45 = vsel %vm440_vm5, %v437_v21, %v439_v41  ;;  %v442_v46 = vsel %vm440_vm5, %v439_v41, %v437_v21 }
 0x105   : > { %v447_v48 = vmul.f32 %v1168_v26, %v441_v45  ;;  %v448_v29 = vmul.f32 %v1168_v26, %v442_v46 }
 0x107   : > { %v464_v53 = vpop.permute.xlu1 %463  ;;  %v457_v59 = vmul.f32 %v452_v40, %v447_v48  ;;  %v458_v60 = vmul.f32 %v456_v3, %v448_v29 }
 0x108   : > { %v466_v56 = vsel %vm465_vm6, %v462_v47, %v464_v53  ;;  %v467_v57 = vsel %vm465_vm6, %v464_v53, %v462_v47  ;;  %v556_v34 = vpop.permute.xlu0 %555 }
 0x109   : > { %v472_v26 = vmul.f32 %v1207_v58, %v466_v56  ;;  %v473_v61 = vmul.f32 %v1207_v58, %v467_v57  ;;  %v459_v7 = vadd.f32 %v457_v59, %v434_v63  ;;  %v460_v8 = vadd.f32 %v458_v60, %v435_v0 }
 0x10b   : > { %v482_v1 = vmul.f32 %v477_v50, %v472_v26  ;;  %v483_v2 = vmul.f32 %v481_v52, %v473_v61  ;;  %v489_v4 = vpop.permute.xlu1 %488 }
 0x10c   : > { %v491_v6 = vsel %vm490_vm7, %v487_v36, %v489_v4  ;;  %v492_v58 = vsel %vm490_vm7, %v489_v4, %v487_v36 }
 0x10d   : > { %v497_v9 = vmul.f32 %v495_v22, %v491_v6  ;;  %v498_v10 = vmul.f32 %v495_v22, %v492_v58  ;;  %v484_v11 = vadd.f32 %v482_v1, %v459_v7  ;;  %v485_v12 = vadd.f32 %v483_v2, %v460_v8 }
 0x10f   : > { %v507_v13 = vmul.f32 %v704_v37, %v497_v9  ;;  %v508_v14 = vmul.f32 %v705_v5, %v498_v10  ;;  %v524_v15 = vpop.permute.xlu1 %523 }
 0x111   : > { %v509_v16 = vadd.f32 %v507_v13, %v484_v11  ;;  %v510_v17 = vadd.f32 %v508_v14, %v485_v12 }
 0x113   : > { %v517_v21 = vadd.f32 %v515_v19, %v509_v16  ;;  %v518_v24 = vadd.f32 %v515_v19, %v510_v17 }
 0x114   : > { %v540_v25 = vpop.permute.xlu1 %539 }
 0x115   : > { %v519_v28 = vmax.f32 %v517_v21, 0.0  ;;  %v520_v31 = vmax.f32 %v518_v24, 0.0 }
 0x117   : > { %v529_v27 = vrot.slane %v519_v28, %v1177_v30  ;;  %v533_v33 = vrot.slane %v520_v31, %v1177_v30  ;;  %v545_v22 = vrot.slane %v519_v28, %v1180_v32  ;;  %v549_v18 = vrot.slane %v520_v31, %v1180_v32 }
 0x118   : > { %v561_v20 = vrot.slane %v519_v28, %v1194_v42  ;;  %v565_v35 = vrot.slane %v520_v31, %v1194_v42  ;;  %v577_v38 = vrot.slane %v519_v28, %v1212_v62  ;;  %v581_v39 = vrot.slane %v520_v31, %v1212_v62 }
 0x119   : > { %v534_v40 = vmul.f32 %v529_v27, %v524_v15  ;;  %v535_v41 = vmul.f32 %v533_v33, %v524_v15  ;;  %v550_v43 = vmul.f32 %v545_v22, %v540_v25  ;;  %v551_v44 = vmul.f32 %v549_v18, %v540_v25  ;;  %v572_v45 = vpop.permute.xlu1 %571 }
 0x11a   : > { %v566_v47 = vmul.f32 %v561_v20, %v556_v34  ;;  %v567_v32 = vmul.f32 %v565_v35, %v556_v34  ;;  %v582_v29 = vmul.f32 %v577_v38, %v572_v45  ;;  %v583_v42 = vmul.f32 %v581_v39, %v572_v45 }
 0x11b   : > { %v552_v30 = vadd.f32 %v550_v43, %v534_v40  ;;  %v553_v46 = vadd.f32 %v551_v44, %v535_v41 }
 0x11d   : > { %v568_v3 = vadd.f32 %v566_v47, %v552_v30  ;;  %v569_v48 = vadd.f32 %v567_v32, %v553_v46 }
 0x11e   : > { %v590_v49 = vpop.permute.xlu1 %589 }
 0x11f   : > { %v584_v50 = vadd.f32 %v582_v29, %v568_v3  ;;  %v585_v62 = vadd.f32 %v583_v42, %v569_v48 }
 0x121   : > { %v592_v23 = vadd.f32 %v590_v49, %v584_v50  ;;  %v593_v51 = vadd.f32 %v590_v49, %v585_v62 }
 0x123   : > { %v594_v52 = vmax.f32 %v592_v23, 0.0  ;;  %v595_v53 = vmax.f32 %v593_v51, 0.0 }
 0x125   : > { %596 = vst [vmem:[%s280_s26] sm:$0xff] %v594_v52  ;;  %597 = vst [vmem:[%s280_s26 + $0x8] sm:$0xff] %v595_v53 }
 0x126   : > { %875 = shalt.err (!%p872_p10)
}
 0x127   : > { %s876_s20 = scalar_lea.hbm %s1263_s29, 256  ;;  %s880_s13 = scalar_lea.hbm %s1313_s6, 512 }
 0x128   : > { %p877_p1 = scmp.ne.s32.totalorder %s1263_s29, %s876_s20  ;;  %p881_p3 = scmp.lt.u32.totalorder %s1263_s29, %s1313_s6 }
 0x129   : > { %p882_p4 = scmp.lt.u32.totalorder %s880_s13, %s876_s20  ;;  %p884_p6 = scmp.lt.u32.totalorder %s876_s20, %s1263_s29 }
 0x12a   : > { %p878_p2 = pnand %p877_p1, %p1082_p8 }
 0x12b   : > { %p883_p11 = por %p882_p4, %p881_p3 }
 0x12c   : > { %p879_p7 = pneg %p878_p2 }
 0x12d   : > { %p885_p9 = por %p884_p6, %p883_p11 }
 0x12f   : > { %p886_p12 = pnand %p885_p9, %p879_p7 }
 0x131   : > { %889 = shalt.err (!%p886_p12)
}
 0x132   : > { %719 = dma.vmem_to_hbm [thread:$0]  (%p1082_p8), %s1265_s30, 256, %s1263_s29, %s599_s27  }
 0x133 PF: > { %s625_s26 = sand.u32 1, %s920_s21   ;;  %p1332_p13 = scmp.ne.s32.totalorder %s1318_s28, 0 }
 0x134   : > { %p1333_p0 = scmp.ge.s32.totalorder %s932_s24, 2  ;;  %s626_s14 = scalar_lea.sflag [#allocation4], %s625_s26 }
 0x136   : > { %p730_p5 = pnand %p1333_p0, %p1332_p13 }
 0x138   : > { %915 = dma.done.wait (!%p730_p5), %s626_s14, 256  }
 0x139   : > { %917 = vsyncadd (!%p730_p5), %s626_s14, 4294967040  ;;  %p20_p10 = scmp.ge.s32.totalorder %s1038_s8, 4   ;;  %s1334_s21 = smov %s924_s22 }
 0x13a   : > { %s1335_s22 = smov %s928_s23  ;;  %s1336_s23 = smov %s1074_s10 }
 0x13b   : > { %s1337_s24 = smov %s1038_s8  ;;  %22 = sbr.rel (!%p20_p10) target bundleno = 6 (0x6), region = 93 }
 0x142   :  { %631 = vsyncpa [#allocation3], 1 }
 0x143   :  { %633 = vsyncpa [#allocation3 + $0x1], 1 }
 0x144   :  { %634 = vsyncpa [#allocation6], 1 }
 0x145   :  { %635 = vsyncpa [#allocation4], 1 }
 0x146   :  { %637 = vsyncpa [#allocation4 + $0x1], 1 }

</bundles_post_ra>
